<compile_context>
chip_gen: v7x
topology: tpu7x:2x2x1
jax: 0.10.0
libtpu: 0.0.40
codegen_flags: <defaults>
</compile_context>

<pallas_src>
import jax
import jax.numpy as jnp
from jax.experimental import pallas as pl
from jax.experimental.pallas import tpu as pltpu

_LANE = 128
_SUBLANE = 8


def _round_up(x, m):
    return ((x + m - 1) // m) * m


def _logreg_kernel(x_ref, w_ref, b_ref, o_ref):
    # x_ref: (tm, D) f32   w_ref: (D, Cp) bf16   b_ref: (1, Cp) f32
    # o_ref: (tm, C)  f32  with C = num_classes <= Cp
    x = x_ref[...].astype(jnp.bfloat16)            # in-kernel cast: VPU work hidden under the matmul
    logits = jnp.dot(x, w_ref[...], preferred_element_type=jnp.float32)
    logits = logits + b_ref[...]                   # padded classes carry a -1e30 bias
    m = jnp.max(logits, axis=-1, keepdims=True)    # numerically stable softmax
    e = jnp.exp(logits - m)                        # padded classes underflow to exactly 0
    denom = jnp.sum(e, axis=-1, keepdims=True)
    num_classes = o_ref.shape[-1]
    # Exact divide (NOT approx reciprocal) so rows sum to 1 to f32 accuracy.
    o_ref[...] = e[:, :num_classes] / denom


def _vmem_budget_bytes():
    """Usable VMEM budget in bytes, generation-aware with headroom."""
    try:
        cap = pltpu.get_tpu_info().vmem_capacity_bytes
    except Exception:
        cap = 64 * 1024 * 1024            # conservative default = v7x per-core VMEM
    # ~25% headroom for compiler scratch/spills; cap at 96 MiB (v5e/v6e have
    # 128 MiB physical, v7x 64 MiB -> budget 48 MiB there).
    return int(min((cap * 3) // 4, 96 * 1024 * 1024))


def _derive_tm(D, Cp, C, budget, tm_cap=1024):
    """Largest row tile (multiple of 8) that fits the VMEM budget."""
    resident = D * Cp * 2 + Cp * 4        # single-buffered bf16 weights + f32 bias
    per_row = (2 * D * 4                  # double-buffered f32 x tile
               + 2 * C * 4                # double-buffered f32 out tile
               + 2 * Cp * 4)              # f32 logits / exp intermediates
    tm = (budget - resident) // per_row
    return max(_SUBLANE, min(tm_cap, (tm // _SUBLANE) * _SUBLANE))


def logreg_predict_proba(samples, w_padded, b_padded, num_classes):
    """samples: (N, D) float32, w_padded: (D, Cp) bf16, b_padded: (1, Cp) f32.

    Returns (N, num_classes) f32 probabilities.
    """
    if samples.dtype != jnp.float32:
        samples = samples.astype(jnp.float32)
    N, D = samples.shape
    Cp = w_padded.shape[1]

    budget = _vmem_budget_bytes()
    tm = _derive_tm(D, Cp, num_classes, budget)
    # Keep at least 2 grid steps when the batch allows it: feeds both v7x
    # TensorCores (grid axis is "parallel") and overlaps DMA with compute.
    tm = min(tm, max(_SUBLANE, _round_up(pl.cdiv(N, 2), _SUBLANE)))
    grid = (pl.cdiv(N, tm),)              # ragged last block is masked by Pallas

    grid_spec = pltpu.PrefetchScalarGridSpec(
        num_scalar_prefetch=0,
        grid=grid,
        in_specs=[
            pl.BlockSpec((tm, D), lambda i: (i, 0)),      # f32 sample row tile
            # Constant index_map -> block stays resident; single buffer only.
            pl.BlockSpec((D, Cp), lambda i: (0, 0), pipeline_mode=pl.Buffered(1)),
            pl.BlockSpec((1, Cp), lambda i: (0, 0), pipeline_mode=pl.Buffered(1)),
        ],
        # Only the real classes are written back (16x less writeback than a
        # 128-lane-padded f32 output when num_classes << 128); output kept f32
        # since this stream is now much smaller than the f32 input stream.
        out_specs=pl.BlockSpec((tm, num_classes), lambda i: (i, 0)),
    )

    # TODO(synk): for very large num_features, add a K ("arbitrary") grid axis
    # with an f32 VMEM accumulator instead of shrinking tm (matters on v7x's
    # 64 MiB VMEM); unnecessary at linear-probe feature sizes.
    return pl.pallas_call(
        _logreg_kernel,
        out_shape=jax.ShapeDtypeStruct((N, num_classes), jnp.float32),
        grid_spec=grid_spec,
        compiler_params=pltpu.CompilerParams(
            dimension_semantics=("parallel",),   # row tiles shard across TCs
            vmem_limit_bytes=budget,
        ),
    )(samples, w_padded, b_padded)


class LogRegModule:
    """Mirrors the PyTorch LogRegModule forward: returns {'preds', 'target'}."""

    def __init__(self, C_reg, num_classes, num_features, key):
        # Deterministic synthetic "fitted" estimator parameters.
        k1, k2 = jax.random.split(key)
        self.coef = 0.1 * jax.random.normal(
            k1, (num_classes, num_features), dtype=jnp.float32
        )
        self.intercept = 0.01 * jax.random.normal(
            k2, (num_classes,), dtype=jnp.float32
        )
        self.C_reg = C_reg                 # regularization only affects fit()
        self.num_classes = num_classes

        # Pre-transpose + lane-pad once (not per forward call).  Padded weight
        # columns are zero; padded bias entries are a large finite negative so
        # exp underflows to exactly 0 (no inf-inf NaN risk) -- those columns
        # are never written to HBM anyway.
        Cp = _round_up(num_classes, _LANE)
        w = jnp.zeros((num_features, Cp), dtype=jnp.bfloat16)
        self._w = w.at[:, :num_classes].set(self.coef.T.astype(jnp.bfloat16))
        b = jnp.full((1, Cp), -1e30, dtype=jnp.float32)
        self._b = b.at[0, :num_classes].set(self.intercept)

    def forward(self, samples, targets):
        probas = logreg_predict_proba(
            samples, self._w, self._b, self.num_classes
        )
        return {"preds": probas, "target": targets}

    # TODO(synk): fit() (cuML/sklearn L-BFGS training path) has no Pallas
    # equivalent here; only the fitted-model forward (predict_proba) is ported.


if __name__ == "__main__":
    key = jax.random.PRNGKey(0)
    k_samples, k_targets, k_params = jax.random.split(key, 3)

    N, D, NUM_CLASSES = 128, 64, 8
    samples = jax.random.normal(k_samples, (N, D), dtype=jnp.float32)
    targets = jax.random.randint(k_targets, (N,), 0, NUM_CLASSES, dtype=jnp.int32)

    module = LogRegModule(C_reg=1.0, num_classes=NUM_CLASSES,
                          num_features=D, key=k_params)
    out = module.forward(samples, targets)
    preds = jax.block_until_ready(out["preds"])

    assert preds.shape == (N, NUM_CLASSES)
    assert preds.dtype == jnp.float32

    # Exact divide in the kernel -> rows of the softmax sum to ~1 (f32 rounding).
    row_sums = jnp.sum(preds, axis=-1)
    assert bool(jnp.allclose(row_sums, 1.0, atol=1e-3))

    # Cross-check against plain f32 JAX reference (bf16 matmul -> small error).
    ref = jax.nn.softmax(samples @ module.coef.T + module.intercept, axis=-1)
    assert bool(jnp.allclose(preds, ref, atol=2e-2))

    print("KERNEL_OK")
</pallas_src>

<mosaic_0001>
module attributes {stable_mosaic.version = 11 : i64} {
  func.func @_logreg_kernel(%arg0: i32, %arg1: memref<64x64xf32, #tpu.memory_space<vmem>>, %arg2: memref<64x128xbf16, #tpu.memory_space<vmem>>, %arg3: memref<1x128xf32, #tpu.memory_space<vmem>>, %arg4: memref<64x8xf32, #tpu.memory_space<vmem>>) attributes {dimension_semantics = [#tpu.dimension_semantics<parallel>], iteration_bounds = array<i64: 2>, scalar_prefetch = 0 : i64, scratch_operands = 0 : i64, tpu.core_type = #tpu.core_type<tc>, window_params = [{transform_indices = @transform_0, window_bounds = array<i64: 64, 64>}, {pipeline_mode = #tpu.pipeline_mode<synchronous>, transform_indices = @transform_1, window_bounds = array<i64: 64, 128>}, {pipeline_mode = #tpu.pipeline_mode<synchronous>, transform_indices = @transform_2, window_bounds = array<i64: 1, 128>}, {transform_indices = @transform_3, window_bounds = array<i64: 64, 8>}]} {
    %c0 = arith.constant 0 : index
    %c0_0 = arith.constant 0 : index
    %0 = vector.load %arg1[%c0, %c0_0] : memref<64x64xf32, #tpu.memory_space<vmem>>, vector<64x64xf32>
    %1 = arith.truncf %0 : vector<64x64xf32> to vector<64x64xbf16>
    %c0_1 = arith.constant 0 : index
    %c0_2 = arith.constant 0 : index
    %2 = vector.load %arg2[%c0_1, %c0_2] : memref<64x128xbf16, #tpu.memory_space<vmem>>, vector<64x128xbf16>
    %cst = arith.constant dense<0.000000e+00> : vector<64x128xf32>
    %3 = tpu.matmul %1, %2, %cst {dimension_numbers = #tpu.dot_dimension_numbers<[1], [0], [0], [1], [0, 0, 1, 1], [], []>} : vector<64x64xbf16>, vector<64x128xbf16>, vector<64x128xf32> -> vector<64x128xf32>
    %c0_3 = arith.constant 0 : index
    %c0_4 = arith.constant 0 : index
    %4 = vector.load %arg3[%c0_3, %c0_4] : memref<1x128xf32, #tpu.memory_space<vmem>>, vector<1x128xf32>
    %5 = vector.broadcast %4 : vector<1x128xf32> to vector<64x128xf32>
    %6 = arith.addf %3, %5 : vector<64x128xf32>
    %cst_5 = arith.constant dense<0xFF800000> : vector<64xf32>
    %7 = vector.multi_reduction <maximumf>, %6, %cst_5 [1] : vector<64x128xf32> to vector<64xf32>
    %8 = vector.shape_cast %7 : vector<64xf32> to vector<64x1xf32>
    %9 = vector.broadcast %8 : vector<64x1xf32> to vector<64x128xf32>
    %10 = arith.subf %6, %9 : vector<64x128xf32>
    %11 = math.exp %10 : vector<64x128xf32>
    %cst_6 = arith.constant dense<0.000000e+00> : vector<64xf32>
    %12 = vector.multi_reduction <add>, %11, %cst_6 [1] : vector<64x128xf32> to vector<64xf32>
    %13 = vector.shape_cast %12 : vector<64xf32> to vector<64x1xf32>
    %14 = vector.extract_strided_slice %11 {offsets = [0, 0], sizes = [64, 8], strides = [1, 1]} : vector<64x128xf32> to vector<64x8xf32>
    %15 = vector.broadcast %13 : vector<64x1xf32> to vector<64x8xf32>
    %16 = arith.divf %14, %15 : vector<64x8xf32>
    %c0_7 = arith.constant 0 : index
    %c0_8 = arith.constant 0 : index
    %17 = vector.load %arg4[%c0_7, %c0_8] : memref<64x8xf32, #tpu.memory_space<vmem>>, vector<64x8xf32>
    tpu.vector_store %arg4[%c0_7, %c0_8], %16 {strides = array<i32>} : memref<64x8xf32, #tpu.memory_space<vmem>>, vector<64x8xf32>,
    return
  }
  func.func @transform_0(%arg0: i32) -> (i32, i32) {
    %c0_i32 = arith.constant 0 : i32
    %c0_i32_0 = arith.constant 0 : i32
    return %arg0, %c0_i32 : i32, i32
  }
  func.func @transform_1(%arg0: i32) -> (i32, i32) {
    %c0_i32 = arith.constant 0 : i32
    %c0_i32_0 = arith.constant 0 : i32
    %c0_i32_1 = arith.constant 0 : i32
    return %c0_i32, %c0_i32_0 : i32, i32
  }
  func.func @transform_2(%arg0: i32) -> (i32, i32) {
    %c0_i32 = arith.constant 0 : i32
    %c0_i32_0 = arith.constant 0 : i32
    %c0_i32_1 = arith.constant 0 : i32
    return %c0_i32, %c0_i32_0 : i32, i32
  }
  func.func @transform_3(%arg0: i32) -> (i32, i32) {
    %c0_i32 = arith.constant 0 : i32
    %c0_i32_0 = arith.constant 0 : i32
    return %arg0, %c0_i32 : i32, i32
  }
}

</mosaic_0001>

<bundles_post_ra>
// kernel: tpu_custom_call.1
= control target key start
LH: loop header
LB: loop body
LE: loop exit
PB: predicated region body
PF: predicated region fallthrough
CT: control target
= control target key end

     0   :  { %s565_s12 = smov 0   ;;  %s616_s0 = inlined_call_operand.vmem [shape: f32[128,64], index: 0, kind: input, shape index: {}]   ;;  %s617_s1 = inlined_call_operand.vmem [shape: bf16[64,128], index: 1, kind: input, shape index: {}]   ;;  %s618_s2 = inlined_call_operand.vmem [shape: f32[1,128], index: 2, kind: input, shape index: {}]   ;;  %s619_s3 = inlined_call_operand.vmem [shape: f32[128,8], index: 3, kind: output, shape index: {}]  }
   0x1 LB: > { %s441_s13 = sadd.s32 4294967295, %s543_s12   ;;  %p445_p0 = scmp.ge.s32.totalorder %s543_s12, 1  ;;  %s543_s12 = sphi %s565_s12, %s13_s12  }
   0x2   : > { %p138_p1 = scmp.lt.s32.totalorder %s543_s12, 3 }
   0x4   : > { %p139_p2 = pnand %p445_p0, %p138_p1 }
   0x5   : > { %v501_v0 = vld [vmem:[%s617_s1] sm:$0xff] (!%p139_p2)   ;;  %s446_s16 = sshll.u32 (!%p139_p2), %s441_s13, 3  ;;  %v502_v1 = vld [vmem:[%s617_s1 + $0x8] sm:$0xff] (!%p139_p2)   ;;  %v503_v2 = vld [vmem:[%s617_s1 + $0x10] sm:$0xff] (!%p139_p2)   ;;  %vm226_vm0 = vcmask (!%p139_p2), 523264   ;;  %vm376_vm1 = vcmask (!%p139_p2), 64512  }
   0x6   : > { %142 = sbr.rel (%p139_p2) target bundleno = 566 (0x236), region = 32  ;;  %p163_p3 = scmp.lt.s32.totalorder (!%p139_p2), %s446_s16, 15  ;;  %469 = vmatprep.subr.bf16.mxu0 (!%p139_p2), %v501_v0  ;;  %485 = vmatprep.subr.bf16.mxu1 (!%p139_p2), %v501_v0  ;;  %v504_v5 = vld [vmem:[%s617_s1 + $0x18] sm:$0xff] (!%p139_p2)   ;;  %v450_v16 = vld [vmem:[%s618_s2] ss:$0 sm:$0xff] (!%p139_p2) }
   0x7   : > { %470 = vmatpush3.bf16.msra.mxu0 (!%p139_p2), %v501_v0  ;;  %489 = vmatpush3.bf16.msra.mxu1 (!%p139_p2), %v501_v0 }
   0x8   : > { %471 = vmatprep.subr.bf16.mxu0 (!%p139_p2), %v502_v1  ;;  %486 = vmatprep.subr.bf16.mxu1 (!%p139_p2), %v502_v1 }
   0xb   : > { %472 = vmatpush3.bf16.msra.mxu0 (!%p139_p2), %v502_v1  ;;  %490 = vmatpush3.bf16.msra.mxu1 (!%p139_p2), %v502_v1 }
   0xc   : > { %473 = vmatprep.subr.bf16.mxu0 (!%p139_p2), %v503_v2  ;;  %487 = vmatprep.subr.bf16.mxu1 (!%p139_p2), %v503_v2 }
   0xd   : > { %s621_s16 = smov (!%p163_p3, %s446_s16), 15 }
   0xe   : > { %s447_s21 = sshll.u32 %s621_s16, 3 }
   0xf   : > { %s166_s24 = scalar_lea.vmem %s616_s0, %s447_s21  ;;  %474 = vmatpush3.bf16.msra.mxu0 %v503_v2  ;;  %491 = vmatpush3.bf16.msra.mxu1 %v503_v2  ;;  %s172_s4 = scalar_lea.vmem %s619_s3, %s447_s21 }
  0x10   : > { %v175_v3 = vld [vmem:[%s166_s24] sm:$0xff]  ;;  %v176_v4 = vld [vmem:[%s166_s24 + $0x8] sm:$0xff]  ;;  %v177_v10 = vld [vmem:[%s166_s24 + $0x10] sm:$0xff]  ;;  %475 = vmatprep.subr.bf16.mxu0 %v504_v5  ;;  %488 = vmatprep.subr.bf16.mxu1 %v504_v5 }
  0x11   : > { %v183_v6 = vpack.c.bf16 %v176_v4, %v175_v3  ;;  %v179_v7 = vld [vmem:[%s166_s24 + $0x20] sm:$0xff]  ;;  %v180_v8 = vld [vmem:[%s166_s24 + $0x28] sm:$0xff]  ;;  %v178_v11 = vld [vmem:[%s166_s24 + $0x18] sm:$0xff] }
  0x12   : > { %v185_v9 = vpack.c.bf16 %v180_v8, %v179_v7  ;;  %v181_v12 = vld [vmem:[%s166_s24 + $0x30] sm:$0xff]  ;;  %v182_v13 = vld [vmem:[%s166_s24 + $0x38] sm:$0xff]  ;;  %v184_v14 = vpack.c.bf16 %v178_v11, %v177_v10 }
  0x13   : > { %477 = vmatprep.mubr.msk.bf16.mxu0 %vm226_vm0, %v183_v6  ;;  %v186_v15 = vpack.c.bf16 %v182_v13, %v181_v12  ;;  %476 = vmatpush3.bf16.msra.mxu0 %v504_v5 }
  0x14   : > { %481 = vmatprep.mubr.msk.bf16.mxu1 %vm226_vm0, %v185_v9  ;;  %492 = vmatpush3.bf16.msra.mxu1 %v504_v5 }
  0x16   : > { %478 = vmatmul.mubr.msk.bf16.vlgmr.msra.gmra.mrb[0].mxu0 %vm226_vm0, %v184_v14 }
  0x17   : > { %482 = vmatmul.mubr.msk.bf16.vlgmr.msra.gmra.mrb[0].mxu1 %vm226_vm0, %v186_v15 }
  0xe9   : > { %v479_v17 = vpop.f32.mrb[0].mxu0 }
  0xea   : > { %v483_v18 = vpop.f32.mrb[0].mxu1  ;;  %v282_v19 = vadd.f32 %v479_v17, %v450_v16  ;;  %v273_v20 = vpop.f32.mrb[1].mxu0 }
  0xeb   : > { %v289_v21 = vpop.f32.mrb[1].mxu1  ;;  %v274_v22 = vadd.f32 %v450_v16, %v273_v20  ;;  %v480_v23 = vpop.f32.mrb[2].mxu0  ;;  %v298_v32 = vadd.f32 %v483_v18, %v450_v16 }
  0xec   : > { %v484_v24 = vpop.f32.mrb[2].mxu1  ;;  %308 = vmax.xlane.f32.xlu1 %v282_v19  ;;  %v276_v25 = vpop.f32.mrb[3].mxu0  ;;  %v290_v27 = vadd.f32 %v450_v16, %v289_v21  ;;  %v285_v28 = vadd.f32 %v480_v23, %v450_v16 }
  0xed   : > { %v292_v26 = vpop.f32.mrb[3].mxu1  ;;  %304 = vmax.xlane.f32.xlu0 %v274_v22  ;;  %v277_v30 = vadd.f32 %v450_v16, %v276_v25  ;;  %v301_v31 = vadd.f32 %v484_v24, %v450_v16 }
  0xee   : > { %v293_v29 = vadd.f32 %v450_v16, %v292_v26 }
  0xf0   : > { %310 = vmax.xlane.f32.xlu1 %v285_v28 }
  0xf1   : > { %312 = vmax.xlane.f32.xlu0 %v290_v27 }
  0xf4   : > { %314 = vmax.xlane.f32.xlu1 %v293_v29 }
  0xf5   : > { %306 = vmax.xlane.f32.xlu0 %v277_v30 }
  0xf8   : > { %318 = vmax.xlane.f32.xlu1 %v301_v31 }
  0xf9   : > { %316 = vmax.xlane.f32.xlu0 %v298_v32 }
 0x179   : > { %v309_v33 = vpop.xlane.xlu1 %308 }
 0x17a   : > { %v322_v34 = vsub.f32 %v282_v19, %v309_v33  ;;  %v305_v35 = vpop.xlane.xlu0 %304 }
 0x17b   : > { %v320_v36 = vsub.f32 %v274_v22, %v305_v35 }
 0x17c   : > { %v332_v37 = vmul.f32 1.442695, %v322_v34 }
 0x17d   : > { %v328_v38 = vmul.f32 1.442695, %v320_v36  ;;  %v311_v39 = vpop.xlane.xlu1 %310 }
 0x17e   : > { %505 = vpow2.f32 %v332_v37  ;;  %v323_v40 = vsub.f32 %v285_v28, %v311_v39  ;;  %v313_v41 = vpop.xlane.xlu0 %312 }
 0x17f   : > { %v324_v42 = vsub.f32 %v290_v27, %v313_v41  ;;  %507 = vpow2.f32 %v328_v38 }
 0x180   : > { %v334_v43 = vmul.f32 1.442695, %v323_v40 }
 0x181   : > { %v315_v44 = vpop.xlane.xlu1 %314  ;;  %v336_v45 = vmul.f32 1.442695, %v324_v42 }
 0x182   : > { %509 = vpow2.f32 %v334_v43  ;;  %v325_v46 = vsub.f32 %v293_v29, %v315_v44  ;;  %v307_v47 = vpop.xlane.xlu0 %306 }
 0x183   : > { %v321_v48 = vsub.f32 %v277_v30, %v307_v47  ;;  %511 = vpow2.f32 %v336_v45 }
 0x184   : > { %v338_v51 = vmul.f32 1.442695, %v325_v46 }
 0x185   : > { %v330_v49 = vmul.f32 1.442695, %v321_v48  ;;  %v319_v50 = vpop.xlane.xlu1 %318 }
 0x186   : > { %v317_v52 = vpop.xlane.xlu0 %316  ;;  %v327_v53 = vsub.f32 %v301_v31, %v319_v50 }
 0x187   : > { %513 = vpow2.f32 %v330_v49  ;;  %v326_v54 = vsub.f32 %v298_v32, %v317_v52 }
 0x188   : > { %v506_v55 = vpop.eup %505  ;;  %515 = vpow2.f32 %v338_v51  ;;  %v342_v58 = vmul.f32 1.442695, %v327_v53 }
 0x189   : > { %v340_v56 = vmul.f32 1.442695, %v326_v54  ;;  %348 = vadd.xlane.f32.xlu0 %v506_v55  ;;  %v508_v57 = vpop.eup %507 }
 0x18b   : > { %517 = vpow2.f32 %v340_v56 }
 0x18c   : > { %v510_v59 = vpop.eup %509  ;;  %519 = vpow2.f32 %v342_v58 }
 0x18d   : > { %350 = vadd.xlane.f32.xlu1 %v510_v59  ;;  %344 = vadd.xlane.f32.xlu0 %v508_v57  ;;  %v512_v60 = vpop.eup %511 }
 0x191   : > { %v514_v61 = vpop.eup %513  ;;  %352 = vadd.xlane.f32.xlu0 %v512_v60 }
 0x192   : > { %346 = vadd.xlane.f32.xlu1 %v514_v61  ;;  %v516_v62 = vpop.eup %515 }
 0x195   : > { %v518_v63 = vpop.eup %517 }
 0x196   : > { %354 = vadd.xlane.f32.xlu1 %v516_v62  ;;  %356 = vadd.xlane.f32.xlu0 %v518_v63  ;;  %v520_v0 = vpop.eup %519 }
 0x19a   : > { %358 = vadd.xlane.f32.xlu1 %v520_v0 }
 0x216   : > { %v349_v1 = vpop.xlane.xlu0 %348 }
 0x217   : > { %521 = vrcp.f32 %v349_v1 }
 0x21a   : > { %v351_v2 = vpop.xlane.xlu1 %350  ;;  %v345_v3 = vpop.xlane.xlu0 %344 }
 0x21b   : > { %523 = vrcp.f32 %v351_v2 }
 0x21c   : > { %525 = vrcp.f32 %v345_v3 }
 0x21e   : > { %v353_v4 = vpop.xlane.xlu0 %352 }
 0x21f   : > { %527 = vrcp.f32 %v353_v4  ;;  %v347_v5 = vpop.xlane.xlu1 %346 }
 0x220   : > { %529 = vrcp.f32 %v347_v5 }
 0x221   : > { %v522_v6 = vpop.eup %521 }
 0x222   : > { %v365_v7 = vmul.f32 %v522_v6, %v506_v55 }
 0x223   : > { %v355_v8 = vpop.xlane.xlu1 %354  ;;  %v357_v9 = vpop.xlane.xlu0 %356 }
 0x224   : > { %379 = vst.msk [vmem:[%s172_s4 + $0x10] sm:$0xff] %vm376_vm1, %v365_v7  ;;  %531 = vrcp.f32 %v355_v8 }
 0x225   : > { %v524_v10 = vpop.eup %523  ;;  %533 = vrcp.f32 %v357_v9 }
 0x226   : > { %v526_v11 = vpop.eup %525  ;;  %v367_v12 = vmul.f32 %v524_v10, %v510_v59 }
 0x227   : > { %v361_v13 = vmul.f32 %v526_v11, %v508_v57  ;;  %v359_v14 = vpop.xlane.xlu1 %358 }
 0x228   : > { %380 = vst.msk [vmem:[%s172_s4 + $0x18] sm:$0xff] %vm376_vm1, %v367_v12  ;;  %535 = vrcp.f32 %v359_v14 }
 0x229   : > { %v528_v15 = vpop.eup %527  ;;  %377 = vst.msk [vmem:[%s172_s4] sm:$0xff] %vm376_vm1, %v361_v13 }
 0x22a   : > { %v530_v16 = vpop.eup %529  ;;  %v369_v17 = vmul.f32 %v528_v15, %v512_v60 }
 0x22b   : > { %v363_v18 = vmul.f32 %v530_v16, %v514_v61 }
 0x22c   : > { %381 = vst.msk [vmem:[%s172_s4 + $0x20] sm:$0xff] %vm376_vm1, %v369_v17 }
 0x22d   : > { %378 = vst.msk [vmem:[%s172_s4 + $0x8] sm:$0xff] %vm376_vm1, %v363_v18 }
 0x22e   : > { %v532_v19 = vpop.eup %531 }
 0x22f   : > { %v534_v20 = vpop.eup %533  ;;  %v371_v21 = vmul.f32 %v532_v19, %v516_v62 }
 0x230   : > { %v373_v22 = vmul.f32 %v534_v20, %v518_v63 }
 0x231   : > { %382 = vst.msk [vmem:[%s172_s4 + $0x28] sm:$0xff] %vm376_vm1, %v371_v21 }
 0x232   : > { %v536_v23 = vpop.eup %535  ;;  %383 = vst.msk [vmem:[%s172_s4 + $0x30] sm:$0xff] %vm376_vm1, %v373_v22 }
 0x233   : > { %v375_v24 = vmul.f32 %v536_v23, %v520_v0 }
 0x235   : > { %384 = vst.msk [vmem:[%s172_s4 + $0x38] sm:$0xff] %vm376_vm1, %v375_v24 }
 0x236 PF: > { %s13_s12 = sadd.s32 1, %s543_s12  }
 0x237   : > { %p10_p4 = scmp.ge.s32.totalorder %s13_s12, 4  }
 0x239   :  { %12 = sbr.rel (!%p10_p4) target bundleno = 1 (0x1), region = 62 }

</bundles_post_ra>
